<compile_context>
chip_gen: v5e
topology: v5e:2x2
jax: 0.10.0
libtpu: 0.0.40
codegen_flags: <defaults>
</compile_context>

<pallas_src>
import math
import jax
import jax.numpy as jnp
from jax.experimental import pallas as pl
from jax.experimental.pallas import tpu as pltpu


def _round_up(x, m):
    return ((x + m - 1) // m) * m


def invlinear_kernel(x_ref, mask_ref, exp_ref, w1b_ref, biasf_ref, w2_ref,
                     b2_ref, out_ref):
    # x_ref:     (Tn, M*F)  streamed batch tile, lane-dense, compute_dtype
    # mask_ref:  (Tn, M)    f32 0./1.
    # exp_ref:   (M, M*F)   0/1 lane-expansion matrix (VMEM-resident)
    # w1b_ref:   (M*F, Hp)  M vertically-tiled copies of W1^T @ beta (H padded)
    # biasf_ref: (1, Hp)    b1 @ beta + bias
    # w2_ref:    (Hp, F)    projector2 weight, pre-transposed
    # b2_ref:    (1, F)
    # out_ref:   (Tn, F)    un-padded output tile
    mask = mask_ref[...]                                            # (Tn, M)
    sizes = jnp.sum(mask, axis=1, keepdims=True)                    # (Tn, 1)

    # Lane-expand the mask across F via a tiny resident 0/1 matmul (MXU):
    #   mask_rep[n, m*F + f] = mask[n, m]
    mask_rep = jnp.dot(mask, exp_ref[...],
                       preferred_element_type=jnp.float32)          # (Tn, M*F)

    # Masked flat activations; the sum over M is folded into the K=M*F matmul.
    xm = x_ref[...].astype(jnp.float32) * mask_rep                  # (Tn, M*F)

    # y = (sum_m mask*x) @ (W1^T @ beta) / sizes + (b1 @ beta + bias)
    # (sizes*b1 term cancelled exactly by the host-side fold: sizes/sizes == 1)
    yh = jnp.dot(xm, w1b_ref[...], preferred_element_type=jnp.float32)  # (Tn, Hp)
    inv = pl.reciprocal(sizes, approx=False)    # approx=True -> EUP slot in prod
    y = yh * inv + biasf_ref[...]                                   # (Tn, Hp)

    # projector2 + softplus
    y2 = jnp.dot(y, w2_ref[...], preferred_element_type=jnp.float32)
    y2 = y2 + b2_ref[...]                                           # (Tn, F)
    out_ref[...] = jax.nn.softplus(y2).astype(out_ref.dtype)


def fold_params_for_kernel(params, M):
    """Host-side parameter folds.  All outputs are f32 and VMEM-resident in the
    kernel (loaded once via constant index maps) -> no steady-state HBM cost."""
    hi = jax.lax.Precision.HIGHEST
    w1_t = params["w1_t"]                                    # (F, H)
    F, H = w1_t.shape
    Hp = _round_up(H, 128)

    w1b = jnp.dot(w1_t, params["beta"], precision=hi)        # (F, H) = W1^T @ beta
    w1b_rep = jnp.tile(w1b, (M, 1))                          # (M*F, H)
    w1b_rep = jnp.pad(w1b_rep, ((0, 0), (0, Hp - H))).astype(jnp.float32)

    bias_fold = jnp.dot(params["b1"], params["beta"], precision=hi) + params["bias"]
    bias_fold = jnp.pad(bias_fold, ((0, 0), (0, Hp - H))).astype(jnp.float32)

    w2 = jnp.pad(params["w2_t"], ((0, Hp - H), (0, 0))).astype(jnp.float32)  # (Hp, F)
    b2 = params["b2"].astype(jnp.float32)                    # (1, F)

    # 0/1 expansion: expand[m, m*F + f] = 1
    expand = jnp.repeat(jnp.eye(M, dtype=jnp.float32), F, axis=1)    # (M, M*F)
    return expand, w1b_rep, bias_fold, w2, b2, Hp


def invlinear_forward(x, mask, params, *, tile_n=2048, compute_dtype=jnp.bfloat16):
    """Fused InvLinear forward.  Only x is streamed in compute_dtype (bf16 by
    default: halves the dominant HBM read); weights stay f32, accum is f32."""
    N, M, F = x.shape
    MF = M * F
    expand, w1b_rep, bias_fold, w2, b2, Hp = fold_params_for_kernel(params, M)

    # Batch tiling: big tiles amortize the ~0.35 us per-grid-step overhead.
    Np0 = _round_up(N, 8)
    tile_n = max(8, min(_round_up(tile_n, 8), Np0))
    # Prefer >= 2 grid steps when there is enough work (v7x: two TensorCores).
    if Np0 >= 16 and Np0 // tile_n < 2:
        tile_n = max(8, (Np0 // 2) // 8 * 8)
    Np = _round_up(N, tile_n)

    x_flat = x.reshape(N, MF).astype(compute_dtype)
    mask_f = mask.astype(jnp.float32)
    if Np != N:
        x_flat = jnp.pad(x_flat, ((0, Np - N), (0, 0)))
        # Pad mask rows with ones so padded rows have sizes == M (no inf/NaN);
        # those rows are sliced off below.
        mask_f = jnp.pad(mask_f, ((0, Np - N), (0, 0)), constant_values=1.0)

    itemsize = jnp.dtype(compute_dtype).itemsize
    weight_bytes = sum(int(a.size) * a.dtype.itemsize
                       for a in (expand, w1b_rep, bias_fold, w2, b2))
    cost = pl.CostEstimate(
        flops=2 * Np * (M * MF + MF * Hp + Hp * F),
        transcendentals=Np * F,
        bytes_accessed=Np * MF * itemsize + Np * M * 4 + Np * F * 4 + weight_bytes,
    )

    out = pl.pallas_call(
        invlinear_kernel,
        out_shape=jax.ShapeDtypeStruct((Np, F), jnp.float32),
        grid=(Np // tile_n,),
        in_specs=[
            # streamed per batch tile (auto double-buffered, lane-dense)
            pl.BlockSpec((tile_n, MF), lambda i: (i, 0)),
            pl.BlockSpec((tile_n, M),  lambda i: (i, 0)),
            # VMEM-resident folded weights/biases (constant index maps)
            pl.BlockSpec((M, MF),  lambda i: (0, 0)),
            pl.BlockSpec((MF, Hp), lambda i: (0, 0)),
            pl.BlockSpec((1, Hp),  lambda i: (0, 0)),
            pl.BlockSpec((Hp, F),  lambda i: (0, 0)),
            pl.BlockSpec((1, F),   lambda i: (0, 0)),
        ],
        out_specs=pl.BlockSpec((tile_n, F), lambda i: (i, 0)),
        compiler_params=pltpu.CompilerParams(
            dimension_semantics=("parallel",),   # v7x: 2 TCs split the grid
            vmem_limit_bytes=32 * 1024 * 1024,   # safe on v5e/v6e and v7x (64 MiB)
        ),
        cost_estimate=cost,
    )(x_flat, mask_f, expand, w1b_rep, bias_fold, w2, b2)

    return out[:N, :]


# ---------------------------------------------------------------------------
# Parameter init (matches the PyTorch reset_parameters) + pure-JAX reference.
# ---------------------------------------------------------------------------

def xavier_uniform(key, shape):
    # shape = (fan_out, fan_in) like torch.nn.Linear weight / beta
    fan_out, fan_in = shape
    bound = math.sqrt(6.0 / (fan_in + fan_out))
    return jax.random.uniform(key, shape, jnp.float32, minval=-bound, maxval=bound)


def init_params(key, in_features, hidden_channels):
    k1, k2, k3, k4 = jax.random.split(key, 4)
    w1 = xavier_uniform(k1, (hidden_channels, in_features))   # projector1.weight
    w2 = xavier_uniform(k2, (in_features, hidden_channels))   # projector2.weight
    beta = xavier_uniform(k3, (hidden_channels, hidden_channels))
    bound = 1.0 / math.sqrt(hidden_channels)                  # fan_in of beta
    bias = jax.random.uniform(k4, (1, hidden_channels), jnp.float32,
                              minval=-bound, maxval=bound)
    return {
        "w1_t": w1.T,                                          # (F, H)
        "b1": jnp.zeros((1, hidden_channels), jnp.float32),
        "beta": beta,                                          # (H, H)
        "bias": bias,                                          # (1, H)
        "w2_t": w2.T,                                          # (H, F)
        "b2": jnp.zeros((1, in_features), jnp.float32),
    }


def reference_forward(x, mask, p):
    hi = jax.lax.Precision.HIGHEST
    h = jnp.einsum("nmf,fh->nmh", x, p["w1_t"], precision=hi) + p["b1"]
    z = h * mask[:, :, None]
    s = z.sum(axis=1)
    sizes = mask.sum(axis=1, keepdims=True)
    y = jnp.dot(s, p["beta"], precision=hi) / sizes + p["bias"]
    y2 = jnp.dot(y, p["w2_t"], precision=hi) + p["b2"]
    return jax.nn.softplus(y2)


if __name__ == "__main__":
    N, M, F_IN, HID = 2, 8, 16, 32

    key = jax.random.PRNGKey(0)
    kx, kp = jax.random.split(key)
    x = jax.random.normal(kx, (N, M, F_IN), jnp.float32)

    # deterministic variable-length mask: sample sizes [8, 5]
    lengths = jnp.array([[M], [M - 3]], dtype=jnp.int32)
    mask = (jnp.arange(M)[None, :] < lengths).astype(jnp.float32)   # (N, M)

    params = init_params(kp, F_IN, HID)
    ref = reference_forward(x, mask, params)

    # f32-streaming path: strict check against the reference.
    out_f32 = jax.block_until_ready(
        invlinear_forward(x, mask, params, compute_dtype=jnp.float32))
    assert out_f32.shape == (N, F_IN)
    assert jnp.allclose(out_f32, ref, atol=1e-4, rtol=1e-4)

    # bf16 x-streaming path (the default / production choice on v5e/v6e/v7x):
    # only the streamed x is quantized, so tolerance is much tighter than before.
    out_bf16 = jax.block_until_ready(invlinear_forward(x, mask, params))
    assert out_bf16.shape == (N, F_IN)
    assert jnp.allclose(out_bf16, ref, atol=5e-2, rtol=5e-2)

    print("KERNEL_OK")
</pallas_src>

<mosaic_0001>
module attributes {stable_mosaic.version = 11 : i64} {
  func.func @invlinear_kernel(%arg0: i32, %arg1: memref<8x128xf32, #tpu.memory_space<vmem>>, %arg2: memref<8x8xf32, #tpu.memory_space<vmem>>, %arg3: memref<8x128xf32, #tpu.memory_space<vmem>>, %arg4: memref<128x128xf32, #tpu.memory_space<vmem>>, %arg5: memref<1x128xf32, #tpu.memory_space<vmem>>, %arg6: memref<128x16xf32, #tpu.memory_space<vmem>>, %arg7: memref<1x16xf32, #tpu.memory_space<vmem>>, %arg8: memref<8x16xf32, #tpu.memory_space<vmem>>) attributes {dimension_semantics = [#tpu.dimension_semantics<parallel>], iteration_bounds = array<i64: 1>, scalar_prefetch = 0 : i64, scratch_operands = 0 : i64, tpu.core_type = #tpu.core_type<tc>, window_params = [{transform_indices = @transform_0, window_bounds = array<i64: 8, 128>}, {transform_indices = @transform_1, window_bounds = array<i64: 8, 8>}, {pipeline_mode = #tpu.pipeline_mode<synchronous>, transform_indices = @transform_2, window_bounds = array<i64: 8, 128>}, {pipeline_mode = #tpu.pipeline_mode<synchronous>, transform_indices = @transform_3, window_bounds = array<i64: 128, 128>}, {pipeline_mode = #tpu.pipeline_mode<synchronous>, transform_indices = @transform_4, window_bounds = array<i64: 1, 128>}, {pipeline_mode = #tpu.pipeline_mode<synchronous>, transform_indices = @transform_5, window_bounds = array<i64: 128, 16>}, {pipeline_mode = #tpu.pipeline_mode<synchronous>, transform_indices = @transform_6, window_bounds = array<i64: 1, 16>}, {transform_indices = @transform_7, window_bounds = array<i64: 8, 16>}]} {
    %c0 = arith.constant 0 : index
    %c0_0 = arith.constant 0 : index
    %0 = vector.load %arg2[%c0, %c0_0] : memref<8x8xf32, #tpu.memory_space<vmem>>, vector<8x8xf32>
    %cst = arith.constant dense<0.000000e+00> : vector<8xf32>
    %1 = vector.multi_reduction <add>, %0, %cst [1] : vector<8x8xf32> to vector<8xf32>
    %2 = vector.shape_cast %1 : vector<8xf32> to vector<8x1xf32>
    %c0_1 = arith.constant 0 : index
    %c0_2 = arith.constant 0 : index
    %3 = vector.load %arg3[%c0_1, %c0_2] : memref<8x128xf32, #tpu.memory_space<vmem>>, vector<8x128xf32>
    %cst_3 = arith.constant dense<0.000000e+00> : vector<8x128xf32>
    %4 = tpu.matmul %0, %3, %cst_3 {dimension_numbers = #tpu.dot_dimension_numbers<[1], [0], [0], [1], [0, 0, 1, 1], [], []>} : vector<8x8xf32>, vector<8x128xf32>, vector<8x128xf32> -> vector<8x128xf32>
    %c0_4 = arith.constant 0 : index
    %c0_5 = arith.constant 0 : index
    %5 = vector.load %arg1[%c0_4, %c0_5] : memref<8x128xf32, #tpu.memory_space<vmem>>, vector<8x128xf32>
    %6 = arith.mulf %5, %4 : vector<8x128xf32>
    %c0_6 = arith.constant 0 : index
    %c0_7 = arith.constant 0 : index
    %7 = vector.load %arg4[%c0_6, %c0_7] : memref<128x128xf32, #tpu.memory_space<vmem>>, vector<128x128xf32>
    %cst_8 = arith.constant dense<0.000000e+00> : vector<8x128xf32>
    %8 = tpu.matmul %6, %7, %cst_8 {dimension_numbers = #tpu.dot_dimension_numbers<[1], [0], [0], [1], [0, 0, 1, 1], [], []>} : vector<8x128xf32>, vector<128x128xf32>, vector<8x128xf32> -> vector<8x128xf32>
    %9 = tpu.reciprocal %2 : vector<8x1xf32> -> vector<8x1xf32>
    %10 = vector.broadcast %9 : vector<8x1xf32> to vector<8x128xf32>
    %11 = arith.mulf %8, %10 : vector<8x128xf32>
    %c0_9 = arith.constant 0 : index
    %c0_10 = arith.constant 0 : index
    %12 = vector.load %arg5[%c0_9, %c0_10] : memref<1x128xf32, #tpu.memory_space<vmem>>, vector<1x128xf32>
    %13 = vector.broadcast %12 : vector<1x128xf32> to vector<8x128xf32>
    %14 = arith.addf %11, %13 : vector<8x128xf32>
    %c0_11 = arith.constant 0 : index
    %c0_12 = arith.constant 0 : index
    %15 = vector.load %arg6[%c0_11, %c0_12] : memref<128x16xf32, #tpu.memory_space<vmem>>, vector<128x16xf32>
    %cst_13 = arith.constant dense<0.000000e+00> : vector<8x16xf32>
    %16 = tpu.matmul %14, %15, %cst_13 {dimension_numbers = #tpu.dot_dimension_numbers<[1], [0], [0], [1], [0, 0, 1, 1], [], []>} : vector<8x128xf32>, vector<128x16xf32>, vector<8x16xf32> -> vector<8x16xf32>
    %c0_14 = arith.constant 0 : index
    %c0_15 = arith.constant 0 : index
    %17 = vector.load %arg7[%c0_14, %c0_15] : memref<1x16xf32, #tpu.memory_space<vmem>>, vector<1x16xf32>
    %18 = vector.broadcast %17 : vector<1x16xf32> to vector<8x16xf32>
    %19 = arith.addf %16, %18 : vector<8x16xf32>
    %cst_16 = arith.constant 0.000000e+00 : f32
    %20 = vector.broadcast %cst_16 : f32 to vector<8x16xf32>
    %21 = arith.maximumf %19, %20 : vector<8x16xf32>
    %22 = vector.broadcast %cst_16 : f32 to vector<8x16xf32>
    %23 = arith.subf %19, %22 : vector<8x16xf32>
    %24 = arith.cmpf one, %23, %23 : vector<8x16xf32>
    %25 = vector.broadcast %cst_16 : f32 to vector<8x16xf32>
    %26 = arith.addf %19, %25 : vector<8x16xf32>
    %27 = math.absf %23 : vector<8x16xf32>
    %cst_17 = arith.constant 0.000000e+00 : f32
    %28 = vector.broadcast %cst_17 : f32 to vector<8x16xf32>
    %29 = arith.subf %28, %27 : vector<8x16xf32>
    %30 = math.exp %29 : vector<8x16xf32>
    %31 = math.log1p %30 : vector<8x16xf32>
    %32 = arith.addf %21, %31 : vector<8x16xf32>
    %33 = arith.select %24, %26, %32 : vector<8x16xi1>, vector<8x16xf32>
    %c0_18 = arith.constant 0 : index
    %c0_19 = arith.constant 0 : index
    %34 = vector.load %arg8[%c0_18, %c0_19] : memref<8x16xf32, #tpu.memory_space<vmem>>, vector<8x16xf32>
    tpu.vector_store %arg8[%c0_18, %c0_19], %33 {strides = array<i32>} : memref<8x16xf32, #tpu.memory_space<vmem>>, vector<8x16xf32>,
    return
  }
  func.func @transform_0(%arg0: i32) -> (i32, i32) {
    %c0_i32 = arith.constant 0 : i32
    %c0_i32_0 = arith.constant 0 : i32
    return %arg0, %c0_i32 : i32, i32
  }
  func.func @transform_1(%arg0: i32) -> (i32, i32) {
    %c0_i32 = arith.constant 0 : i32
    %c0_i32_0 = arith.constant 0 : i32
    return %arg0, %c0_i32 : i32, i32
  }
  func.func @transform_2(%arg0: i32) -> (i32, i32) {
    %c0_i32 = arith.constant 0 : i32
    %c0_i32_0 = arith.constant 0 : i32
    %c0_i32_1 = arith.constant 0 : i32
    return %c0_i32, %c0_i32_0 : i32, i32
  }
  func.func @transform_3(%arg0: i32) -> (i32, i32) {
    %c0_i32 = arith.constant 0 : i32
    %c0_i32_0 = arith.constant 0 : i32
    %c0_i32_1 = arith.constant 0 : i32
    return %c0_i32, %c0_i32_0 : i32, i32
  }
  func.func @transform_4(%arg0: i32) -> (i32, i32) {
    %c0_i32 = arith.constant 0 : i32
    %c0_i32_0 = arith.constant 0 : i32
    %c0_i32_1 = arith.constant 0 : i32
    return %c0_i32, %c0_i32_0 : i32, i32
  }
  func.func @transform_5(%arg0: i32) -> (i32, i32) {
    %c0_i32 = arith.constant 0 : i32
    %c0_i32_0 = arith.constant 0 : i32
    %c0_i32_1 = arith.constant 0 : i32
    return %c0_i32, %c0_i32_0 : i32, i32
  }
  func.func @transform_6(%arg0: i32) -> (i32, i32) {
    %c0_i32 = arith.constant 0 : i32
    %c0_i32_0 = arith.constant 0 : i32
    %c0_i32_1 = arith.constant 0 : i32
    return %c0_i32, %c0_i32_0 : i32, i32
  }
  func.func @transform_7(%arg0: i32) -> (i32, i32) {
    %c0_i32 = arith.constant 0 : i32
    %c0_i32_0 = arith.constant 0 : i32
    return %arg0, %c0_i32 : i32, i32
  }
}

</mosaic_0001>

<bundles_post_ra>
// kernel: tpu_custom_call.1
= control target key start
LH: loop header
LB: loop body
LE: loop exit
PB: predicated region body
PF: predicated region fallthrough
CT: control target
= control target key end

     0   :  { %12 = vsyncpa [#allocation3], 0  ;;  %s424_s0 = inlined_call_operand.vmem [shape: f32[8,128], index: 0, kind: input, shape index: {}]   ;;  %s425_s1 = inlined_call_operand.vmem [shape: f32[8,8], index: 1, kind: input, shape index: {}]   ;;  %s426_s2 = inlined_call_operand.hbm [shape: f32[8,128], index: 2, kind: input, shape index: {}]   ;;  %s427_s3 = inlined_call_operand.vmem [shape: f32[128,128], index: 3, kind: input, shape index: {}]   ;;  %s428_s4 = inlined_call_operand.vmem [shape: f32[1,128], index: 4, kind: input, shape index: {}]   ;;  %s429_s5 = inlined_call_operand.vmem [shape: f32[128,16], index: 5, kind: input, shape index: {}]   ;;  %s430_s6 = inlined_call_operand.vmem [shape: f32[1,16], index: 6, kind: input, shape index: {}]   ;;  %s431_s7 = inlined_call_operand.hbm [shape: f32[8,16], index: 7, kind: output, shape index: {}]  }
   0x1   :  { %13 = vsyncpa [#allocation4], 0  ;;  %s23_s26 = sshll.u32 %s426_s2, 4  ;;  %s268_s27 = smov [#allocation2]   ;;  %s24_s26 = int_to_ptr.hbm [resolvable:$true] %s23_s26 }
   0x2   :  { %s25_s28 = sshll.u32 %s268_s27, 4  ;;  %s26_s28 = int_to_ptr.vmem [resolvable:$true] %s25_s28 }
   0x3   :  { %28 = dma.hbm_to_vmem [thread:$0]  %s24_s26, 128, %s26_s28, [#allocation3]  }
   0x4   :  { %264 = dma.done.wait [#allocation3], 128  }
   0x5   :  { %265 = vsyncadd [#allocation3], 4294967168  ;;  %vm42_vm0 = vcmask 64512   ;;  %v46_v0 = vld [vmem:[#allocation2] sm:$0xff]  ;;  %v87_v2 = vld [vmem:[%s427_s3 + $0x78] sm:$0xff]  ;;  %s195_s24 = sshll.u32 %s431_s7, 4  ;;  %s196_s24 = int_to_ptr.hbm [resolvable:$true] %s195_s24 }
   0x6   :  { %v41_v1 = vld [vmem:[%s425_s1] sm:$0xff]  ;;  %65 = vmatpush.msra.mxu0 %v46_v0  ;;  %88 = vmatpush.msra.mxu1 %v87_v2  ;;  %v86_v3 = vld [vmem:[%s427_s3 + $0x70] sm:$0xff]  ;;  %v85_v5 = vld [vmem:[%s427_s3 + $0x68] sm:$0xff]  ;;  %vm186_vm6 = vcmask 130048  }
   0x7   :  { %v43_v4 = vsel %vm42_vm0, %v41_v1, 0.0  ;;  %205 = vmatmul.msk.f32.vlgmr.msra.gmra.mxu0 %vm42_vm0, %v41_v1  ;;  %v84_v6 = vld [vmem:[%s427_s3 + $0x60] sm:$0xff]  ;;  %v83_v7 = vld [vmem:[%s427_s3 + $0x58] sm:$0xff]  ;;  %v82_v8 = vld [vmem:[%s427_s3 + $0x50] sm:$0xff] }
   0x8   :  { %44 = vadd.xlane.f32.xlu0 %v43_v4  ;;  %89 = vmatpush.msra.mxu1 %v86_v3  ;;  %v81_v9 = vld [vmem:[%s427_s3 + $0x48] sm:$0xff]  ;;  %v80_v10 = vld [vmem:[%s427_s3 + $0x40] sm:$0xff]  ;;  %v79_v11 = vld [vmem:[%s427_s3 + $0x38] sm:$0xff] }
   0x9   :  { %v78_v12 = vld [vmem:[%s427_s3 + $0x30] sm:$0xff]  ;;  %v77_v13 = vld [vmem:[%s427_s3 + $0x28] sm:$0xff]  ;;  %v76_v14 = vld [vmem:[%s427_s3 + $0x20] sm:$0xff] }
   0xa   :  { %90 = vmatpush.msra.mxu1 %v85_v5  ;;  %v75_v15 = vld [vmem:[%s427_s3 + $0x18] sm:$0xff]  ;;  %v74_v16 = vld [vmem:[%s427_s3 + $0x10] sm:$0xff]  ;;  %v73_v17 = vld [vmem:[%s427_s3 + $0x8] sm:$0xff] }
   0xb   :  { %v72_v18 = vld [vmem:[%s427_s3] sm:$0xff]  ;;  %v143_v19 = vld [vmem:[%s429_s5 + $0x78] sm:$0xff]  ;;  %v142_v20 = vld [vmem:[%s429_s5 + $0x70] sm:$0xff] }
   0xc   :  { %91 = vmatpush.msra.mxu1 %v84_v6  ;;  %148 = vmatpush.msra.mxu2 %v143_v19  ;;  %v141_v21 = vld [vmem:[%s429_s5 + $0x68] sm:$0xff]  ;;  %v140_v22 = vld [vmem:[%s429_s5 + $0x60] sm:$0xff]  ;;  %v139_v23 = vld [vmem:[%s429_s5 + $0x58] sm:$0xff] }
   0xd   :  { %v138_v24 = vld [vmem:[%s429_s5 + $0x50] sm:$0xff]  ;;  %v137_v25 = vld [vmem:[%s429_s5 + $0x48] sm:$0xff]  ;;  %v136_v26 = vld [vmem:[%s429_s5 + $0x40] sm:$0xff] }
   0xe   :  { %92 = vmatpush.msra.mxu1 %v83_v7  ;;  %149 = vmatpush.msra.mxu2 %v142_v20  ;;  %v135_v27 = vld [vmem:[%s429_s5 + $0x38] sm:$0xff]  ;;  %v134_v28 = vld [vmem:[%s429_s5 + $0x30] sm:$0xff]  ;;  %v133_v29 = vld [vmem:[%s429_s5 + $0x28] sm:$0xff] }
   0xf   :  { %v132_v30 = vld [vmem:[%s429_s5 + $0x20] sm:$0xff]  ;;  %v131_v31 = vld [vmem:[%s429_s5 + $0x18] sm:$0xff]  ;;  %v130_v35 = vld [vmem:[%s429_s5 + $0x10] sm:$0xff] }
  0x10   :  { %93 = vmatpush.msra.mxu1 %v82_v8  ;;  %150 = vmatpush.msra.mxu2 %v141_v21  ;;  %v70_v32 = vld [vmem:[%s424_s0] sm:$0xff]  ;;  %v129_v37 = vld [vmem:[%s429_s5 + $0x8] sm:$0xff] }
  0x11   :  { %v128_v38 = vld [vmem:[%s429_s5] sm:$0xff] }
  0x12   :  { %94 = vmatpush.msra.mxu1 %v81_v9  ;;  %151 = vmatpush.msra.mxu2 %v140_v22  ;;  %v208_v48 = vld [vmem:[%s428_s4] ss:$0 sm:$0xff]  ;;  %s269_s4 = smov [#allocation5]  }
  0x13   :  { %v209_v53 = vld [vmem:[%s430_s6] ss:$0 sm:$0xff]  ;;  %s193_s22 = sshll.u32 %s269_s4, 4  ;;  %s194_s22 = int_to_ptr.vmem [resolvable:$true] %s193_s22 }
  0x14   :  { %95 = vmatpush.msra.mxu1 %v80_v10  ;;  %152 = vmatpush.msra.mxu2 %v139_v23 }
  0x16   :  { %96 = vmatpush.msra.mxu1 %v79_v11  ;;  %153 = vmatpush.msra.mxu2 %v138_v24 }
  0x18   :  { %97 = vmatpush.msra.mxu1 %v78_v12  ;;  %154 = vmatpush.msra.mxu2 %v137_v25 }
  0x1a   :  { %98 = vmatpush.msra.mxu1 %v77_v13  ;;  %155 = vmatpush.msra.mxu2 %v136_v26 }
  0x1c   :  { %99 = vmatpush.msra.mxu1 %v76_v14  ;;  %156 = vmatpush.msra.mxu2 %v135_v27 }
  0x1e   :  { %100 = vmatpush.msra.mxu1 %v75_v15  ;;  %157 = vmatpush.msra.mxu2 %v134_v28 }
  0x20   :  { %101 = vmatpush.msra.mxu1 %v74_v16  ;;  %158 = vmatpush.msra.mxu2 %v133_v29 }
  0x22   :  { %102 = vmatpush.msra.mxu1 %v73_v17  ;;  %159 = vmatpush.msra.mxu2 %v132_v30 }
  0x24   :  { %103 = vmatpush.msra.mxu1 %v72_v18  ;;  %160 = vmatpush.msra.mxu2 %v131_v31 }
  0x26   :  { %161 = vmatpush.msra.mxu2 %v130_v35 }
  0x28   :  { %162 = vmatpush.msra.mxu2 %v129_v37 }
  0x2a   :  { %163 = vmatpush.msra.mxu2 %v128_v38 }
  0x7b   :  { %v45_v36 = vpop.xlane.xlu0 %44 }
  0x7c   :  { %210 = vrcp.f32 %v45_v36  ;;  %vm113_vm1 = vweird.f32 %v45_v36  ;;  %v119_v43 = vand.u32 2147483648, %v45_v36  ;;  %v117_v45 = vand.u32 2147483647, %v45_v36 }
  0x7e   :  { %v120_v46 = vor.u32 1.1754944e-38, %v119_v43  ;;  %vm118_vm4 = vcmp.eq.f32.partialorder %v117_v45, 8.507059e+37 }
  0x82   :  { %v211_v39 = vpop.eup %210 }
  0x83   :  { %v109_v40 = vmul.f32 %v211_v39, %v45_v36  ;;  %vm114_vm2 = vweird.f32 %v211_v39 }
  0x84   :  { %v67_v33 = vpop.f32.mrf.mxu0  ;;  %vm115_vm3 = vmor %vm113_vm1, %vm114_vm2 }
  0x85   :  { %v71_v34 = vmul.f32 %v70_v32, %v67_v33  ;;  %v110_v41 = vsub.f32 1.0, %v109_v40 }
  0x87   :  { %104 = vmatmul.f32.vlgmr.msra.gmra.mxu1 %v71_v34  ;;  %v111_v42 = vmul.f32 %v211_v39, %v110_v41 }
  0x89   :  { %v112_v44 = vadd.f32 %v211_v39, %v111_v42 }
  0x8b   :  { %v116_v47 = vsel %vm115_vm3, %v211_v39, %v112_v44 }
  0x8c   :  { %v121_v50 = vsel %vm118_vm4, %v120_v46, %v116_v47 }
 0x104   :  { %v105_v49 = vpop.f32.mrf.mxu1 }
 0x105   :  { %v122_v51 = vmul.f32 %v121_v50, %v105_v49 }
 0x107   :  { %v127_v52 = vadd.f32 %v208_v48, %v122_v51 }
 0x109   :  { %164 = vmatmul.f32.vlgmr.msra.gmra.mxu2 %v127_v52 }
 0x18c   :  { %v165_v54 = vpop.f32.mrf.mxu2 }
 0x18d   :  { %v166_v55 = vadd.f32 %v209_v53, %v165_v54 }
 0x18f   :  { %v171_v56 = vand.u32 2147483647, %v166_v55  ;;  %v168_v3 = vmax.f32 %v166_v55, 0.0  ;;  %vm169_vm7 = vcmp.ne.f32.partialorder %v166_v55, %v166_v55 }
 0x191   :  { %v172_v57 = vsub.f32 0.0, %v171_v56 }
 0x193   :  { %v173_v58 = vmul.f32 1.442695, %v172_v57 }
 0x195   :  { %212 = vpow2.f32 %v173_v58 }
 0x19b   :  { %v213_v59 = vpop.eup %212 }
 0x19c   :  { %v175_v60 = vadd.f32 1.0, %v213_v59  ;;  %v178_v61 = vmul.f32 -0.5, %v213_v59  ;;  %v181_v63 = vand.u32 2147483647, %v213_v59 }
 0x19e   :  { %214 = vlog2.f32 %v175_v60  ;;  %v179_v62 = vadd.f32 1.0, %v178_v61  ;;  %vm182_vm5 = vcmp.lt.f32.partialorder %v181_v63, 0.0004427343 }
 0x1a0   :  { %v180_v2 = vmul.f32 %v213_v59, %v179_v62 }
 0x1a4   :  { %v215_v0 = vpop.eup %214 }
 0x1a5   :  { %v177_v1 = vmul.f32 0.6931472, %v215_v0 }
 0x1a7   :  { %v183_v4 = vsel %vm182_vm5, %v180_v2, %v177_v1 }
 0x1a8   :  { %v184_v5 = vadd.f32 %v183_v4, %v168_v3 }
 0x1aa   :  { %v185_v6 = vsel %vm169_vm7, %v166_v55, %v184_v5 }
 0x1ab   :  { %187 = vst.msk [vmem:[#allocation5] sm:$0xff] %vm186_vm6, %v185_v6 }
 0x1ac   :  { %198 = dma.vmem_to_hbm [thread:$0]  %s194_s22, 128, %s196_s24, [#allocation4]  }
 0x1ad   :  { %266 = dma.done.wait [#allocation4], 128  }
 0x1ae   :  { %267 = vsyncadd [#allocation4], 4294967168 }
 0x1af   :  { %203 = vsyncpa [#allocation3], 1 }
 0x1b0   :  { %204 = vsyncpa [#allocation4], 1 }

</bundles_post_ra>
